<compile_context>
chip_gen: v6e
topology: v6e:2x2x1
jax: 0.10.0
libtpu: 0.0.40
codegen_flags: <defaults>
</compile_context>

<pallas_src>
import functools
import math

import jax
import jax.numpy as jnp
from jax.experimental import pallas as pl
from jax.experimental.pallas import tpu as pltpu

H1, H2, H3 = 500, 100, 50          # true PyTorch hidden widths
H1P, H2P, H3P = 512, 128, 128      # lane-padded widths (padding is zero-filled)


def _round_up(x, m):
    return (x + m - 1) // m * m


def _mlp_kernel(x_ref, w1_ref, b1_ref, w2_ref, b2_ref, w3_ref, b3_ref,
                w4_ref, b4_ref, out_ref, *, use_sigmoid: bool):
    # Fused 4-layer MLP on one batch tile; bf16 matmul inputs, f32 accumulation.
    h = jnp.dot(x_ref[...], w1_ref[...],
                preferred_element_type=jnp.float32) + b1_ref[...]
    h = jnp.maximum(h, 0.0)                   # ReLU  (Dropout(0.1) == identity in eval)
    h = jnp.dot(h.astype(jnp.bfloat16), w2_ref[...],
                preferred_element_type=jnp.float32) + b2_ref[...]
    h = jnp.maximum(h, 0.0)
    h = jnp.dot(h.astype(jnp.bfloat16), w3_ref[...],
                preferred_element_type=jnp.float32) + b3_ref[...]
    h = jnp.maximum(h, 0.0)
    logits = jnp.dot(h.astype(jnp.bfloat16), w4_ref[...],
                     preferred_element_type=jnp.float32) + b4_ref[...]

    if use_sigmoid:
        out_ref[...] = jax.nn.sigmoid(logits)
    else:
        # numerically stable softmax over the class axis; approx reciprocal -> EUP slot
        m = jnp.max(logits, axis=-1, keepdims=True)
        e = jnp.exp(logits - m)
        out_ref[...] = e * pl.reciprocal(jnp.sum(e, axis=-1, keepdims=True),
                                         approx=True)


def efnn_forward(x, params, num_classes, *, batch_tile=512):
    """x: (B, in_dim) float32. params: lane-padded bf16 weights / f32 biases.

    Returns (B, num_classes) float32 probabilities.
    """
    B, in_dim = x.shape
    C = num_classes

    # Choose a batch tile and zero-pad B so it divides evenly (padded rows sliced off).
    TB = min(batch_tile, _round_up(B, 8))
    B_pad = _round_up(B, TB)
    if B_pad != B:
        x = jnp.pad(x, ((0, B_pad - B), (0, 0)))

    x_bf16 = x.astype(jnp.bfloat16)   # halves x HBM traffic, bf16 MXU path

    w1, b1 = params["w1"], params["b1"]
    w2, b2 = params["w2"], params["b2"]
    w3, b3 = params["w3"], params["b3"]
    w4, b4 = params["w4"], params["b4"]

    kernel = functools.partial(_mlp_kernel, use_sigmoid=(C == 2))

    # Weights/biases stay resident in VMEM across every batch tile.
    def resident(a):
        return pl.BlockSpec(a.shape, lambda i: (0,) * a.ndim)

    flops = 2 * B_pad * (in_dim * H1P + H1P * H2P + H2P * H3P + H3P * C)
    bytes_accessed = (
        x_bf16.size * 2
        + sum(int(p.size) * p.dtype.itemsize
              for p in (w1, b1, w2, b2, w3, b3, w4, b4))
        + B_pad * C * 4)

    out = pl.pallas_call(
        kernel,
        out_shape=jax.ShapeDtypeStruct((B_pad, C), jnp.float32),
        grid=(B_pad // TB,),
        in_specs=[
            pl.BlockSpec((TB, in_dim), lambda i: (i, 0)),
            resident(w1), resident(b1),
            resident(w2), resident(b2),
            resident(w3), resident(b3),
            resident(w4), resident(b4),
        ],
        out_specs=pl.BlockSpec((TB, C), lambda i: (i, 0)),
        compiler_params=pltpu.CompilerParams(
            dimension_semantics=("parallel",)),
        cost_estimate=pl.CostEstimate(
            flops=flops,
            transcendentals=B_pad * max(C, 1),
            bytes_accessed=bytes_accessed),
    )(x_bf16, w1, b1, w2, b2, w3, b3, w4, b4)

    return out[:B]


def init_params(key, in_dim, num_classes):
    """PyTorch-style uniform init at the true widths, then zero-pad to lane widths.

    Weights are stored bf16 (matmul inputs); biases stay f32.
    """
    dims = [(in_dim, H1, in_dim, H1P),
            (H1, H2, H1P, H2P),
            (H2, H3, H2P, H3P),
            (H3, num_classes, H3P, num_classes)]
    params = {}
    for i, (fan_in, fan_out, fan_in_p, fan_out_p) in enumerate(dims, start=1):
        key, kw, kb = jax.random.split(key, 3)
        bound = 1.0 / math.sqrt(fan_in)
        w = jax.random.uniform(kw, (fan_in, fan_out), jnp.float32,
                               minval=-bound, maxval=bound)
        b = jax.random.uniform(kb, (1, fan_out), jnp.float32,
                               minval=-bound, maxval=bound)
        w_p = jnp.zeros((fan_in_p, fan_out_p), jnp.float32).at[:fan_in, :fan_out].set(w)
        b_p = jnp.zeros((1, fan_out_p), jnp.float32).at[:, :fan_out].set(b)
        params[f"w{i}"] = w_p.astype(jnp.bfloat16)
        params[f"b{i}"] = b_p
    return params


if __name__ == "__main__":
    key = jax.random.PRNGKey(0)
    batch, in_dim, num_classes = 8, 32, 2

    kx, kp = jax.random.split(key)
    x = jax.random.normal(kx, (batch, in_dim), jnp.float32)
    params = init_params(kp, in_dim, num_classes)

    out = efnn_forward(x, params, num_classes)
    out = jax.block_until_ready(out)

    assert out.shape == (batch, num_classes)
    assert bool(jnp.all(jnp.isfinite(out)))
    assert bool(jnp.all((out >= 0.0) & (out <= 1.0)))
    print("KERNEL_OK")
</pallas_src>

<mosaic_0001>
module attributes {stable_mosaic.version = 11 : i64} {
  func.func @_mlp_kernel(%arg0: i32, %arg1: memref<8x32xbf16, #tpu.memory_space<vmem>>, %arg2: memref<32x512xbf16, #tpu.memory_space<vmem>>, %arg3: memref<1x512xf32, #tpu.memory_space<vmem>>, %arg4: memref<512x128xbf16, #tpu.memory_space<vmem>>, %arg5: memref<1x128xf32, #tpu.memory_space<vmem>>, %arg6: memref<128x128xbf16, #tpu.memory_space<vmem>>, %arg7: memref<1x128xf32, #tpu.memory_space<vmem>>, %arg8: memref<128x2xbf16, #tpu.memory_space<vmem>>, %arg9: memref<1x2xf32, #tpu.memory_space<vmem>>, %arg10: memref<8x2xf32, #tpu.memory_space<vmem>>) attributes {dimension_semantics = [#tpu.dimension_semantics<parallel>], iteration_bounds = array<i64: 1>, scalar_prefetch = 0 : i64, scratch_operands = 0 : i64, tpu.core_type = #tpu.core_type<tc>, window_params = [{transform_indices = @transform_0, window_bounds = array<i64: 8, 32>}, {pipeline_mode = #tpu.pipeline_mode<synchronous>, transform_indices = @transform_1, window_bounds = array<i64: 32, 512>}, {pipeline_mode = #tpu.pipeline_mode<synchronous>, transform_indices = @transform_2, window_bounds = array<i64: 1, 512>}, {pipeline_mode = #tpu.pipeline_mode<synchronous>, transform_indices = @transform_3, window_bounds = array<i64: 512, 128>}, {pipeline_mode = #tpu.pipeline_mode<synchronous>, transform_indices = @transform_4, window_bounds = array<i64: 1, 128>}, {pipeline_mode = #tpu.pipeline_mode<synchronous>, transform_indices = @transform_5, window_bounds = array<i64: 128, 128>}, {pipeline_mode = #tpu.pipeline_mode<synchronous>, transform_indices = @transform_6, window_bounds = array<i64: 1, 128>}, {pipeline_mode = #tpu.pipeline_mode<synchronous>, transform_indices = @transform_7, window_bounds = array<i64: 128, 2>}, {pipeline_mode = #tpu.pipeline_mode<synchronous>, transform_indices = @transform_8, window_bounds = array<i64: 1, 2>}, {transform_indices = @transform_9, window_bounds = array<i64: 8, 2>}]} {
    %c0 = arith.constant 0 : index
    %c0_0 = arith.constant 0 : index
    %0 = vector.load %arg1[%c0, %c0_0] : memref<8x32xbf16, #tpu.memory_space<vmem>>, vector<8x32xbf16>
    %c0_1 = arith.constant 0 : index
    %c0_2 = arith.constant 0 : index
    %1 = vector.load %arg2[%c0_1, %c0_2] : memref<32x512xbf16, #tpu.memory_space<vmem>>, vector<32x512xbf16>
    %cst = arith.constant dense<0.000000e+00> : vector<8x512xf32>
    %2 = tpu.matmul %0, %1, %cst {dimension_numbers = #tpu.dot_dimension_numbers<[1], [0], [0], [1], [0, 0, 1, 1], [], []>} : vector<8x32xbf16>, vector<32x512xbf16>, vector<8x512xf32> -> vector<8x512xf32>
    %c0_3 = arith.constant 0 : index
    %c0_4 = arith.constant 0 : index
    %3 = vector.load %arg3[%c0_3, %c0_4] : memref<1x512xf32, #tpu.memory_space<vmem>>, vector<1x512xf32>
    %4 = vector.broadcast %3 : vector<1x512xf32> to vector<8x512xf32>
    %5 = arith.addf %2, %4 : vector<8x512xf32>
    %cst_5 = arith.constant 0.000000e+00 : f32
    %6 = vector.broadcast %cst_5 : f32 to vector<8x512xf32>
    %7 = arith.maximumf %5, %6 : vector<8x512xf32>
    %8 = arith.truncf %7 : vector<8x512xf32> to vector<8x512xbf16>
    %c0_6 = arith.constant 0 : index
    %c0_7 = arith.constant 0 : index
    %9 = vector.load %arg4[%c0_6, %c0_7] : memref<512x128xbf16, #tpu.memory_space<vmem>>, vector<512x128xbf16>
    %cst_8 = arith.constant dense<0.000000e+00> : vector<8x128xf32>
    %10 = tpu.matmul %8, %9, %cst_8 {dimension_numbers = #tpu.dot_dimension_numbers<[1], [0], [0], [1], [0, 0, 1, 1], [], []>} : vector<8x512xbf16>, vector<512x128xbf16>, vector<8x128xf32> -> vector<8x128xf32>
    %c0_9 = arith.constant 0 : index
    %c0_10 = arith.constant 0 : index
    %11 = vector.load %arg5[%c0_9, %c0_10] : memref<1x128xf32, #tpu.memory_space<vmem>>, vector<1x128xf32>
    %12 = vector.broadcast %11 : vector<1x128xf32> to vector<8x128xf32>
    %13 = arith.addf %10, %12 : vector<8x128xf32>
    %cst_11 = arith.constant 0.000000e+00 : f32
    %14 = vector.broadcast %cst_11 : f32 to vector<8x128xf32>
    %15 = arith.maximumf %13, %14 : vector<8x128xf32>
    %16 = arith.truncf %15 : vector<8x128xf32> to vector<8x128xbf16>
    %c0_12 = arith.constant 0 : index
    %c0_13 = arith.constant 0 : index
    %17 = vector.load %arg6[%c0_12, %c0_13] : memref<128x128xbf16, #tpu.memory_space<vmem>>, vector<128x128xbf16>
    %cst_14 = arith.constant dense<0.000000e+00> : vector<8x128xf32>
    %18 = tpu.matmul %16, %17, %cst_14 {dimension_numbers = #tpu.dot_dimension_numbers<[1], [0], [0], [1], [0, 0, 1, 1], [], []>} : vector<8x128xbf16>, vector<128x128xbf16>, vector<8x128xf32> -> vector<8x128xf32>
    %c0_15 = arith.constant 0 : index
    %c0_16 = arith.constant 0 : index
    %19 = vector.load %arg7[%c0_15, %c0_16] : memref<1x128xf32, #tpu.memory_space<vmem>>, vector<1x128xf32>
    %20 = vector.broadcast %19 : vector<1x128xf32> to vector<8x128xf32>
    %21 = arith.addf %18, %20 : vector<8x128xf32>
    %cst_17 = arith.constant 0.000000e+00 : f32
    %22 = vector.broadcast %cst_17 : f32 to vector<8x128xf32>
    %23 = arith.maximumf %21, %22 : vector<8x128xf32>
    %24 = arith.truncf %23 : vector<8x128xf32> to vector<8x128xbf16>
    %c0_18 = arith.constant 0 : index
    %c0_19 = arith.constant 0 : index
    %25 = vector.load %arg8[%c0_18, %c0_19] : memref<128x2xbf16, #tpu.memory_space<vmem>>, vector<128x2xbf16>
    %cst_20 = arith.constant dense<0.000000e+00> : vector<8x2xf32>
    %26 = tpu.matmul %24, %25, %cst_20 {dimension_numbers = #tpu.dot_dimension_numbers<[1], [0], [0], [1], [0, 0, 1, 1], [], []>} : vector<8x128xbf16>, vector<128x2xbf16>, vector<8x2xf32> -> vector<8x2xf32>
    %c0_21 = arith.constant 0 : index
    %c0_22 = arith.constant 0 : index
    %27 = vector.load %arg9[%c0_21, %c0_22] : memref<1x2xf32, #tpu.memory_space<vmem>>, vector<1x2xf32>
    %28 = vector.broadcast %27 : vector<1x2xf32> to vector<8x2xf32>
    %29 = arith.addf %26, %28 : vector<8x2xf32>
    %30 = arith.negf %29 : vector<8x2xf32>
    %31 = math.exp %30 : vector<8x2xf32>
    %cst_23 = arith.constant 1.000000e+00 : f32
    %32 = vector.broadcast %cst_23 : f32 to vector<8x2xf32>
    %33 = arith.addf %32, %31 : vector<8x2xf32>
    %34 = arith.divf %32, %33 : vector<8x2xf32>
    %c0_24 = arith.constant 0 : index
    %c0_25 = arith.constant 0 : index
    %35 = vector.load %arg10[%c0_24, %c0_25] : memref<8x2xf32, #tpu.memory_space<vmem>>, vector<8x2xf32>
    tpu.vector_store %arg10[%c0_24, %c0_25], %34 {strides = array<i32>} : memref<8x2xf32, #tpu.memory_space<vmem>>, vector<8x2xf32>,
    return
  }
  func.func @transform_0(%arg0: i32) -> (i32, i32) {
    %c0_i32 = arith.constant 0 : i32
    %c0_i32_0 = arith.constant 0 : i32
    return %arg0, %c0_i32 : i32, i32
  }
  func.func @transform_1(%arg0: i32) -> (i32, i32) {
    %c0_i32 = arith.constant 0 : i32
    %c0_i32_0 = arith.constant 0 : i32
    %c0_i32_1 = arith.constant 0 : i32
    return %c0_i32, %c0_i32_0 : i32, i32
  }
  func.func @transform_2(%arg0: i32) -> (i32, i32) {
    %c0_i32 = arith.constant 0 : i32
    %c0_i32_0 = arith.constant 0 : i32
    %c0_i32_1 = arith.constant 0 : i32
    return %c0_i32, %c0_i32_0 : i32, i32
  }
  func.func @transform_3(%arg0: i32) -> (i32, i32) {
    %c0_i32 = arith.constant 0 : i32
    %c0_i32_0 = arith.constant 0 : i32
    %c0_i32_1 = arith.constant 0 : i32
    return %c0_i32, %c0_i32_0 : i32, i32
  }
  func.func @transform_4(%arg0: i32) -> (i32, i32) {
    %c0_i32 = arith.constant 0 : i32
    %c0_i32_0 = arith.constant 0 : i32
    %c0_i32_1 = arith.constant 0 : i32
    return %c0_i32, %c0_i32_0 : i32, i32
  }
  func.func @transform_5(%arg0: i32) -> (i32, i32) {
    %c0_i32 = arith.constant 0 : i32
    %c0_i32_0 = arith.constant 0 : i32
    %c0_i32_1 = arith.constant 0 : i32
    return %c0_i32, %c0_i32_0 : i32, i32
  }
  func.func @transform_6(%arg0: i32) -> (i32, i32) {
    %c0_i32 = arith.constant 0 : i32
    %c0_i32_0 = arith.constant 0 : i32
    %c0_i32_1 = arith.constant 0 : i32
    return %c0_i32, %c0_i32_0 : i32, i32
  }
  func.func @transform_7(%arg0: i32) -> (i32, i32) {
    %c0_i32 = arith.constant 0 : i32
    %c0_i32_0 = arith.constant 0 : i32
    %c0_i32_1 = arith.constant 0 : i32
    return %c0_i32, %c0_i32_0 : i32, i32
  }
  func.func @transform_8(%arg0: i32) -> (i32, i32) {
    %c0_i32 = arith.constant 0 : i32
    %c0_i32_0 = arith.constant 0 : i32
    %c0_i32_1 = arith.constant 0 : i32
    return %c0_i32, %c0_i32_0 : i32, i32
  }
  func.func @transform_9(%arg0: i32) -> (i32, i32) {
    %c0_i32 = arith.constant 0 : i32
    %c0_i32_0 = arith.constant 0 : i32
    return %arg0, %c0_i32 : i32, i32
  }
}

</mosaic_0001>

<bundles_post_ra>
// kernel: tpu_custom_call.1
= control target key start
LH: loop header
LB: loop body
LE: loop exit
PB: predicated region body
PF: predicated region fallthrough
CT: control target
= control target key end

     0   :  { %14 = vsyncpa [#allocation3], 0  ;;  %s1268_s0 = inlined_call_operand.hbm [shape: bf16[8,32], index: 0, kind: input, shape index: {}]   ;;  %s1269_s1 = inlined_call_operand.vmem [shape: bf16[32,512], index: 1, kind: input, shape index: {}]   ;;  %s1270_s2 = inlined_call_operand.vmem [shape: f32[1,512], index: 2, kind: input, shape index: {}]   ;;  %s1271_s3 = inlined_call_operand.hbm [shape: bf16[512,128], index: 3, kind: input, shape index: {}]   ;;  %s1272_s4 = inlined_call_operand.vmem [shape: f32[1,128], index: 4, kind: input, shape index: {}]   ;;  %s1273_s5 = inlined_call_operand.hbm [shape: bf16[128,128], index: 5, kind: input, shape index: {}]   ;;  %s1274_s6 = inlined_call_operand.vmem [shape: f32[1,128], index: 6, kind: input, shape index: {}]   ;;  %s1275_s7 = inlined_call_operand.vmem [shape: bf16[128,2], index: 7, kind: input, shape index: {}]   ;;  %s1276_s8 = inlined_call_operand.vmem [shape: f32[1,2], index: 8, kind: input, shape index: {}]   ;;  %s1277_s9 = inlined_call_operand.vmem [shape: f32[8,2], index: 9, kind: output, shape index: {}]  }
   0x1   :  { %15 = vsyncpa [#allocation5], 0  ;;  %s1120_s30 = smov [#allocation4]  }
   0x2   :  { %s35_s10 = sshll.u32 %s1120_s30, 4  ;;  %s36_s10 = int_to_ptr.vmem [resolvable:$true] %s35_s10 }
   0x3   :  { %s1064_s11 = scalar_lea.vmem %s36_s10, 4096  ;;  %p1069_p1 = scmp.lt.s32.totalorder %s36_s10, %s36_s10 }
   0x4   :  { %p1065_p0 = scmp.ne.s32.totalorder %s36_s10, %s1064_s11  ;;  %p1070_p2 = scmp.lt.s32.totalorder %s1064_s11, %s1064_s11 }
   0x6   :  { %p1071_p3 = por %p1070_p2, %p1069_p1 }
   0x8   :  { %p1072_p4 = pnand %p1071_p3, %p1065_p0 }
   0xa   :  { %1075 = shalt.err (!%p1072_p4)
}
   0xb   :  { %s1121_s12 = smov 64   ;;  %s1122_s13 = smov 4  }
   0xc   :  { %41 = dma.hbm_to_vmem [thread:$0]  %s1271_s3, 4096, %s36_s10, [#allocation5], %s1121_s12, %s1121_s12, %s1122_s13  }
   0xd   :  { %s1123_s16 = smov [#allocation2]   ;;  %s1124_s18 = smov [#allocation6]  }
   0xe   :  { %s22_s17 = sshll.u32 %s1123_s16, 4  ;;  %s49_s19 = sshll.u32 %s1124_s18, 4  ;;  %s23_s17 = int_to_ptr.vmem [resolvable:$true] %s22_s17  ;;  %s50_s19 = int_to_ptr.vmem [resolvable:$true] %s49_s19 }
   0xf   :  { %s1084_s20 = scalar_lea.vmem %s23_s17, 64  ;;  %p1089_p6 = scmp.lt.s32.totalorder %s23_s17, %s23_s17 }
  0x10   :  { %p1085_p5 = scmp.ne.s32.totalorder %s23_s17, %s1084_s20  ;;  %p1090_p7 = scmp.lt.s32.totalorder %s1084_s20, %s1084_s20 }
  0x12   :  { %p1091_p8 = por %p1090_p7, %p1089_p6 }
  0x14   :  { %p1092_p9 = pnand %p1091_p8, %p1085_p5 }
  0x16   :  { %1095 = shalt.err (!%p1092_p9)
}
  0x17   :  { %25 = dma.hbm_to_vmem [thread:$0]  %s1268_s0, 64, %s23_s17, [#allocation3]  }
  0x18   :  { %s1104_s23 = scalar_lea.vmem %s50_s19, 1024  ;;  %p1109_p11 = scmp.lt.s32.totalorder %s50_s19, %s50_s19 }
  0x19   :  { %p1105_p10 = scmp.ne.s32.totalorder %s50_s19, %s1104_s23  ;;  %p1110_p12 = scmp.lt.s32.totalorder %s1104_s23, %s1104_s23 }
  0x1b   :  { %p1111_p13 = por %p1110_p12, %p1109_p11 }
  0x1d   :  { %p1112_p0 = pnand %p1111_p13, %p1105_p10 }
  0x1f   :  { %1115 = shalt.err (!%p1112_p0)
}
  0x20   :  { %55 = dma.hbm_to_vmem [thread:$0]  %s1273_s5, 1024, %s50_s19, [#allocation5], %s1121_s12, %s1121_s12, %s1122_s13  }
  0x21   :  { %1116 = dma.done.wait [#allocation3], 64  }
  0x22   :  { %1117 = vsyncadd [#allocation3], 4294967232 }
  0x23   :  { %1118 = dma.done.wait [#allocation5], 5120  }
  0x24   :  { %1119 = vsyncadd [#allocation5], 4294962176  ;;  %v1125_v0 = vmov 0   ;;  %v992_v1 = vld [vmem:[%s1269_s1 + $0x24] ss:$16 sps:$4 sm:$0xff]   ;;  %v1004_v10 = vld [vmem:[#allocation4 + $0x78] sm:$0xff]   ;;  %v83_v43 = vlaneseq }
  0x25   :  { %179 = vmatprep.mubr.bf16.mxu0 %v1125_v0  ;;  %220 = vmatprep.mubr.bf16.mxu1 %v1125_v0  ;;  %v994_v2 = vld [vmem:[%s1269_s1 + $0x2c] ss:$16 sps:$4 sm:$0xff]   ;;  %v996_v3 = vld [vmem:[%s1269_s1 + $0x20] ss:$16 sps:$4 sm:$0xff]   ;;  %v997_v4 = vld [vmem:[%s1269_s1 + $0x28] ss:$16 sps:$4 sm:$0xff]  }
  0x26   :  { %159 = vmatprep.subr.bf16.mxu0 %v992_v1  ;;  %200 = vmatprep.subr.bf16.mxu1 %v994_v2  ;;  %v998_v5 = vld [vmem:[%s1269_s1 + $0x4] ss:$16 sps:$4 sm:$0xff]   ;;  %v1000_v6 = vld [vmem:[%s1269_s1 + $0xc] ss:$16 sps:$4 sm:$0xff]   ;;  %v1002_v7 = vld [vmem:[%s1269_s1] ss:$16 sps:$4 sm:$0xff]  }
  0x27   :  { %160 = vmatpush1.bf16.msra.mxu0 %v996_v3  ;;  %201 = vmatpush1.bf16.msra.mxu1 %v997_v4  ;;  %v1003_v8 = vld [vmem:[%s1269_s1 + $0x8] ss:$16 sps:$4 sm:$0xff]   ;;  %v72_v9 = vld [vmem:[#allocation2] sm:$0xf]  ;;  %vm143_vm0 = vcmask 261120   ;;  %v1012_v18 = vld [vmem:[#allocation4 + $0x68] sm:$0xff]  }
  0x28   :  { %161 = vmatprep.subr.bf16.mxu0 %v998_v5  ;;  %202 = vmatprep.subr.bf16.mxu1 %v1000_v6  ;;  %v1005_v11 = vld [vmem:[#allocation4 + $0xf8] sm:$0xff]   ;;  %v1008_v14 = vld [vmem:[#allocation4 + $0x70] sm:$0xff]   ;;  %v1013_v19 = vld [vmem:[#allocation4 + $0xe8] sm:$0xff]   ;;  %v1126_v42 = vmov 0.0   ;;  %v84_v44 = vshrl.u32 %v83_v43, 7  ;;  %vm1127_vm1 = vmmov 0  }
  0x29   :  { %v1006_v12 = vld [vmem:[#allocation4 + $0x38] sm:$0xff]   ;;  %v1009_v15 = vld [vmem:[#allocation4 + $0xf0] sm:$0xff]   ;;  %v1014_v20 = vld [vmem:[#allocation4 + $0x28] sm:$0xff]   ;;  %vm812_vm2 = vcmask 15360  }
  0x2a   :  { %v1007_v13 = vld [vmem:[#allocation4 + $0xb8] sm:$0xff]   ;;  %v1010_v16 = vld [vmem:[#allocation4 + $0x30] sm:$0xff]   ;;  %v1015_v21 = vld [vmem:[#allocation4 + $0xa8] sm:$0xff]   ;;  %v85_v45 = vsub.s32 0, %v84_v44  ;;  %v93_v46 = vsub.s32 2, %v84_v44  ;;  %v89_v48 = vsub.s32 1, %v84_v44 }
  0x2b   :  { %162 = vmatpush1.bf16.msra.mxu0 %v1002_v7  ;;  %203 = vmatpush1.bf16.msra.mxu1 %v1003_v8  ;;  %v1011_v17 = vld [vmem:[#allocation4 + $0xb0] sm:$0xff]   ;;  %v1016_v22 = vld [vmem:[#allocation4 + $0x60] sm:$0xff]   ;;  %v1020_v26 = vld [vmem:[#allocation4 + $0x58] sm:$0xff]   ;;  %v97_v49 = vsub.s32 3, %v84_v44 }
  0x2c   :  { %882 = vmatprep.subr.bf16.mxu0 %v1004_v10  ;;  %904 = vmatprep.subr.bf16.mxu1 %v1005_v11  ;;  %v1017_v23 = vld [vmem:[#allocation4 + $0xe0] sm:$0xff]   ;;  %v1021_v27 = vld [vmem:[#allocation4 + $0xd8] sm:$0xff]   ;;  %v1024_v30 = vld [vmem:[#allocation4 + $0x50] sm:$0xff]  }
  0x2d   :  { %v1018_v24 = vld [vmem:[#allocation4 + $0x20] sm:$0xff]   ;;  %v1022_v28 = vld [vmem:[#allocation4 + $0x18] sm:$0xff]   ;;  %v1025_v31 = vld [vmem:[#allocation4 + $0xd0] sm:$0xff]  }
  0x2e   :  { %828 = vmatmul.mubr.msk.bf16.vlgmr.msra.gmra.mxu0 %vm143_vm0, %v72_v9  ;;  %829 = vmatmul.mubr.msk.bf16.vlgmr.msra.gmra.mxu1 %vm143_vm0, %v72_v9  ;;  %v1019_v25 = vld [vmem:[#allocation4 + $0xa0] sm:$0xff]   ;;  %v1023_v29 = vld [vmem:[#allocation4 + $0x98] sm:$0xff]   ;;  %v1026_v32 = vld [vmem:[#allocation4 + $0x10] sm:$0xff]  }
  0x2f   :  { %883 = vmatpush3.bf16.msra.mxu0 %v1006_v12  ;;  %905 = vmatpush3.bf16.msra.mxu1 %v1007_v13  ;;  %v1027_v33 = vld [vmem:[#allocation4 + $0x90] sm:$0xff]   ;;  %v1028_v34 = vld [vmem:[#allocation4 + $0x48] sm:$0xff]   ;;  %v1032_v38 = vld [vmem:[#allocation4 + $0x40] sm:$0xff]  }
  0x30   :  { %884 = vmatprep.subr.bf16.mxu0 %v1008_v14  ;;  %906 = vmatprep.subr.bf16.mxu1 %v1009_v15  ;;  %v1029_v35 = vld [vmem:[#allocation4 + $0xc8] sm:$0xff]   ;;  %v1033_v39 = vld [vmem:[#allocation4 + $0xc0] sm:$0xff]   ;;  %v81_v47 = vld [vmem:[%s1270_s2] sm:$0xf] }
  0x31   :  { %v1030_v36 = vld [vmem:[#allocation4 + $0x8] sm:$0xff]   ;;  %v1034_v40 = vld [vmem:[#allocation4] sm:$0xff]   ;;  %v86_v50 = vrot.slane %v81_v47, %v85_v45  ;;  %v94_v51 = vrot.slane %v81_v47, %v93_v46  ;;  %v90_v52 = vrot.slane %v81_v47, %v89_v48  ;;  %v98_v53 = vrot.slane %v81_v47, %v97_v49  ;;  %v1036_v9 = vld [vmem:[#allocation6 + $0x38] sm:$0xff]  }
  0x32   :  { %v1031_v37 = vld [vmem:[#allocation4 + $0x88] sm:$0xff]   ;;  %v1035_v41 = vld [vmem:[#allocation4 + $0x80] sm:$0xff]   ;;  %v1037_v11 = vld [vmem:[#allocation6 + $0x30] sm:$0xff]  }
  0x33   :  { %885 = vmatpush3.bf16.msra.mxu0 %v1010_v16  ;;  %907 = vmatpush3.bf16.msra.mxu1 %v1011_v17  ;;  %v1038_v12 = vld [vmem:[#allocation6 + $0x28] sm:$0xff]   ;;  %v1039_v13 = vld [vmem:[#allocation6 + $0x20] sm:$0xff]   ;;  %v1040_v14 = vld [vmem:[#allocation6 + $0x18] sm:$0xff]  }
  0x34   :  { %886 = vmatprep.subr.bf16.mxu0 %v1012_v18  ;;  %908 = vmatprep.subr.bf16.mxu1 %v1013_v19  ;;  %v1041_v15 = vld [vmem:[#allocation6 + $0x10] sm:$0xff]   ;;  %v1042_v16 = vld [vmem:[#allocation6 + $0x8] sm:$0xff]   ;;  %v1043_v17 = vld [vmem:[#allocation6] sm:$0xff]  }
  0x35   :  { %v1044_v18 = vld [vmem:[%s1275_s7 + $0x38] sm:$0xff]   ;;  %v1045_v19 = vld [vmem:[%s1275_s7 + $0x30] sm:$0xff]  }
  0x37   :  { %887 = vmatpush3.bf16.msra.mxu0 %v1014_v20  ;;  %909 = vmatpush3.bf16.msra.mxu1 %v1015_v21  ;;  %v1046_v20 = vld [vmem:[%s1275_s7 + $0x28] sm:$0xff]   ;;  %v1047_v21 = vld [vmem:[%s1275_s7 + $0x20] sm:$0xff]  }
  0x38   :  { %888 = vmatprep.subr.bf16.mxu0 %v1016_v22  ;;  %910 = vmatprep.subr.bf16.mxu1 %v1017_v23  ;;  %v1048_v22 = vld [vmem:[%s1275_s7 + $0x18] sm:$0xff]   ;;  %v1049_v23 = vld [vmem:[%s1275_s7 + $0x10] sm:$0xff]  }
  0x3b   :  { %889 = vmatpush3.bf16.msra.mxu0 %v1018_v24  ;;  %911 = vmatpush3.bf16.msra.mxu1 %v1019_v25 }
  0x3c   :  { %890 = vmatprep.subr.bf16.mxu0 %v1020_v26  ;;  %912 = vmatprep.subr.bf16.mxu1 %v1021_v27  ;;  %v830_v26 = vld [vmem:[%s1272_s4] ss:$0 sm:$0xff] }
  0x3f   :  { %891 = vmatpush3.bf16.msra.mxu0 %v1022_v28  ;;  %913 = vmatpush3.bf16.msra.mxu1 %v1023_v29 }
  0x40   :  { %892 = vmatprep.subr.bf16.mxu0 %v1024_v30  ;;  %914 = vmatprep.subr.bf16.mxu1 %v1025_v31 }
  0x43   :  { %893 = vmatpush3.bf16.msra.mxu0 %v1026_v32  ;;  %915 = vmatpush3.bf16.msra.mxu1 %v1027_v33 }
  0x44   :  { %894 = vmatprep.subr.bf16.mxu0 %v1028_v34  ;;  %916 = vmatprep.subr.bf16.mxu1 %v1029_v35 }
  0x47   :  { %895 = vmatpush3.bf16.msra.mxu0 %v1030_v36  ;;  %917 = vmatpush3.bf16.msra.mxu1 %v1031_v37 }
  0x48   :  { %896 = vmatprep.subr.bf16.mxu0 %v1032_v38  ;;  %918 = vmatprep.subr.bf16.mxu1 %v1033_v39  ;;  %v1050_v39 = vld [vmem:[%s1275_s7 + $0x8] sm:$0xff]  }
  0x4b   :  { %897 = vmatpush3.bf16.msra.mxu0 %v1034_v40  ;;  %919 = vmatpush3.bf16.msra.mxu1 %v1035_v41  ;;  %v1051_v40 = vld [vmem:[%s1275_s7] sm:$0xff]  }
  0x4c   :  { %944 = vmatprep.subr.bf16.mxu0 %v1126_v42  ;;  %964 = vmatprep.subr.bf16.mxu1 %v1126_v42  ;;  %v863_v41 = vld [vmem:[%s1274_s6] ss:$0 sm:$0xff] }
  0xee   :  { %v181_v54 = vpop.f32.mrf.mxu0  ;;  %v222_v55 = vpop.f32.mrf.mxu1 }
  0xef   :  { %v182_v56 = vadd.f32 %v181_v54, %v86_v50  ;;  %v223_v57 = vadd.f32 %v222_v55, %v94_v51 }
  0xf0   :  { %v183_v58 = vpop.f32.mrf.mxu0  ;;  %v224_v59 = vpop.f32.mrf.mxu1 }
  0xf1   :  { %v231_v60 = vmax.f32 %v223_v57, 0.0  ;;  %v184_v61 = vadd.f32 %v183_v58, %v90_v52  ;;  %v225_v62 = vadd.f32 %v224_v59, %v98_v53  ;;  %v229_v63 = vmax.f32 %v182_v56, 0.0 }
  0xf2   :  { %v185_v0 = vpop.f32.mrf.mxu0  ;;  %v226_v1 = vpop.f32.mrf.mxu1 }
  0xf3   :  { %v230_v2 = vmax.f32 %v184_v61, 0.0  ;;  %v232_v3 = vmax.f32 %v225_v62, 0.0  ;;  %v235_v4 = vpack.c.bf16 %v231_v60, %v231_v60  ;;  %v233_v10 = vpack.c.bf16 %v229_v63, %v229_v63 }
  0xf4   :  { %v186_v5 = vpop.f32.mrf.mxu0  ;;  %v227_v6 = vpop.f32.mrf.mxu1 }
  0xf5   :  { %v234_v7 = vpack.c.bf16 %v230_v2, %v230_v2  ;;  %v236_v8 = vpack.c.bf16 %v232_v3, %v232_v3 }
  0xf7   :  { %532 = vmatprep.mubr.bf16.mxu0 %v234_v7  ;;  %572 = vmatprep.mubr.bf16.mxu1 %v236_v8 }
  0xf8   :  { %533 = vmatmul.mubr.bf16.vlgmr.msra.gmra.mxu0 %v233_v10  ;;  %573 = vmatmul.mubr.bf16.vlgmr.msra.gmra.mxu1 %v235_v4 }
  0xf9   :  { %945 = vmatpush3.bf16.msra.mxu0 %v1036_v9  ;;  %960 = vmatprep.mubr.msk.bf16.mxu0 %vm1127_vm1, %v1126_v42 }
  0xfa   :  { %946 = vmatprep.subr.bf16.mxu0 %v1126_v42  ;;  %980 = vmatprep.mubr.msk.bf16.mxu1 %vm1127_vm1, %v1126_v42 }
  0xfb   :  { %965 = vmatpush3.bf16.msra.mxu1 %v1044_v18 }
  0xfc   :  { %966 = vmatprep.subr.bf16.mxu1 %v1126_v42 }
  0xfd   :  { %947 = vmatpush3.bf16.msra.mxu0 %v1037_v11 }
  0xfe   :  { %948 = vmatprep.subr.bf16.mxu0 %v1126_v42 }
  0xff   :  { %967 = vmatpush3.bf16.msra.mxu1 %v1045_v19 }
 0x100   :  { %968 = vmatprep.subr.bf16.mxu1 %v1126_v42 }
 0x101   :  { %949 = vmatpush3.bf16.msra.mxu0 %v1038_v12 }
 0x102   :  { %950 = vmatprep.subr.bf16.mxu0 %v1126_v42 }
 0x103   :  { %969 = vmatpush3.bf16.msra.mxu1 %v1046_v20 }
 0x104   :  { %970 = vmatprep.subr.bf16.mxu1 %v1126_v42 }
 0x105   :  { %951 = vmatpush3.bf16.msra.mxu0 %v1039_v13 }
 0x106   :  { %952 = vmatprep.subr.bf16.mxu0 %v1126_v42 }
 0x107   :  { %971 = vmatpush3.bf16.msra.mxu1 %v1047_v21 }
 0x108   :  { %972 = vmatprep.subr.bf16.mxu1 %v1126_v42 }
 0x109   :  { %953 = vmatpush3.bf16.msra.mxu0 %v1040_v14 }
 0x10a   :  { %954 = vmatprep.subr.bf16.mxu0 %v1126_v42 }
 0x10b   :  { %973 = vmatpush3.bf16.msra.mxu1 %v1048_v22 }
 0x10c   :  { %974 = vmatprep.subr.bf16.mxu1 %v1126_v42 }
 0x10d   :  { %955 = vmatpush3.bf16.msra.mxu0 %v1041_v15 }
 0x10e   :  { %956 = vmatprep.subr.bf16.mxu0 %v1126_v42 }
 0x10f   :  { %975 = vmatpush3.bf16.msra.mxu1 %v1049_v23 }
 0x110   :  { %976 = vmatprep.subr.bf16.mxu1 %v1126_v42 }
 0x111   :  { %957 = vmatpush3.bf16.msra.mxu0 %v1042_v16 }
 0x112   :  { %958 = vmatprep.subr.bf16.mxu0 %v1126_v42 }
 0x113   :  { %977 = vmatpush3.bf16.msra.mxu1 %v1050_v39 }
 0x114   :  { %978 = vmatprep.subr.bf16.mxu1 %v1126_v42  ;;  %v872_v42 = vld [vmem:[%s1276_s8] ss:$0 sm:$0xff] }
 0x115   :  { %959 = vmatpush3.bf16.msra.mxu0 %v1043_v17 }
 0x117   :  { %979 = vmatpush3.bf16.msra.mxu1 %v1051_v40 }
 0x1b8   :  { %v898_v24 = vpop.f32.mrf.mxu0  ;;  %v920_v25 = vpop.f32.mrf.mxu1 }
 0x1ba   :  { %v899_v27 = vpop.f32.mrf.mxu0  ;;  %v921_v28 = vpop.f32.mrf.mxu1 }
 0x1bb   :  { %v900_v29 = vadd.f32 %v899_v27, %v898_v24  ;;  %v922_v33 = vadd.f32 %v921_v28, %v920_v25 }
 0x1bc   :  { %v901_v30 = vpop.f32.mrf.mxu0  ;;  %v923_v31 = vpop.f32.mrf.mxu1 }
 0x1bd   :  { %v535_v32 = vadd.f32 %v900_v29, %v830_v26 }
 0x1be   :  { %v902_v34 = vpop.f32.mrf.mxu0  ;;  %v924_v35 = vpop.f32.mrf.mxu1 }
 0x1bf   :  { %v575_v36 = vadd.f32 %v922_v33, %v535_v32 }
 0x1c1   :  { %v580_v37 = vmax.f32 %v575_v36, 0.0 }
 0x1c3   :  { %v581_v38 = vpack.c.bf16 %v580_v37, %v580_v37 }
 0x1c5   :  { %961 = vmatmul.mubr.bf16.vlgmr.msra.gmra.mxu0 %v581_v38 }
 0x285   :  { %v687_v43 = vpop.f32.mrf.mxu0 }
 0x286   :  { %v688_v44 = vadd.f32 %v863_v41, %v687_v43 }
 0x287   :  { %v962_v45 = vpop.f32.mrf.mxu0 }
 0x288   :  { %v693_v46 = vmax.f32 %v688_v44, 0.0 }
 0x289   :  { %v690_v47 = vpop.f32.mrf.mxu0 }
 0x28a   :  { %v694_v48 = vpack.c.bf16 %v693_v46, %v693_v46 }
 0x28b   :  { %v963_v49 = vpop.f32.mrf.mxu0 }
 0x28c   :  { %981 = vmatmul.mubr.bf16.vlgmr.msra.gmra.mxu1 %v694_v48 }
 0x34c   :  { %v800_v50 = vpop.f32.mrf.mxu1 }
 0x34d   :  { %v801_v51 = vadd.f32 %v872_v42, %v800_v50 }
 0x34e   :  { %v982_v52 = vpop.f32.mrf.mxu1 }
 0x34f   :  { %v881_v53 = vmul.f32 -1.442695, %v801_v51 }
 0x350   :  { %v803_v54 = vpop.f32.mrf.mxu1 }
 0x351   :  { %1052 = vpow2.f32 %v881_v53 }
 0x352   :  { %v983_v55 = vpop.f32.mrf.mxu1 }
 0x35e   :  { %v1053_v56 = vpop.eup %1052 }
 0x35f   :  { %v809_v57 = vadd.f32 1.0, %v1053_v56 }
 0x361   :  { %1054 = vrcp.f32 %v809_v57 }
 0x36e   :  { %v1055_v58 = vpop.eup %1054 }
 0x36f   :  { %813 = vst.msk [vmem:[%s1277_s9] sm:$0xff] %vm812_vm2, %v1055_v58 }
 0x370   :  { %818 = vsyncpa [#allocation3], 1 }
 0x371   :  { %819 = vsyncpa [#allocation5], 1 }

</bundles_post_ra>
